<compile_context>
chip_gen: v5e
topology: v5e:2x2
jax: 0.10.0
libtpu: 0.0.40
codegen_flags: <defaults>
</compile_context>

<pallas_src>
import jax
import jax.numpy as jnp
from jax.experimental import pallas as pl
from jax.experimental.pallas import tpu as pltpu

_LANES = 128
_BLOCK_BYTES = 8 * 1024 * 1024   # ~8 MiB per data block (v6e/v7x sweet spot; harmless on v5e)
_VMEM_LIMIT = 40 * 1024 * 1024   # 2x(in)+2x(out) 8 MiB blocks + small mean/inv columns


def _normalization_kernel(mean_ref, inv_ref, x_ref, o_ref):
    # mean_ref / inv_ref: (TH, 1) f32 columns, broadcast across the 128-lane axis.
    # x_ref / o_ref:      (TH, 128) lane-dense tile of the collapsed image slab.
    o_ref[...] = ((x_ref[...] - mean_ref[...]) * inv_ref[...]).astype(o_ref.dtype)


def normalization(img, mean, std):
    """(img - mean[:, None, None]) / std[:, None, None] for an NCHW image tensor."""
    B, C, H, W = img.shape
    assert mean.shape == (C,) and std.shape == (C,)

    HW = H * W
    HW_pad = pl.cdiv(HW, _LANES) * _LANES          # keep the lane dim at 128 always
    rows_per_plane = HW_pad // _LANES
    total_rows = B * C * rows_per_plane

    # Collapse (B, C, H, W) -> (total_rows, 128) lane-dense slab.
    x = img.reshape(B, C, HW)
    if HW_pad != HW:
        x = jnp.pad(x, ((0, 0), (0, 0), (0, HW_pad - HW)))
    x = x.reshape(total_rows, _LANES)

    # Hoist the division; expand the per-channel constants to per-row columns so a
    # tile may span channel/batch boundaries (a few KiB of extra HBM traffic).
    mean32 = mean.astype(jnp.float32)
    inv_std = jnp.float32(1.0) / std.astype(jnp.float32)
    mean_col = jnp.tile(jnp.repeat(mean32, rows_per_plane), B).reshape(total_rows, 1)
    inv_col = jnp.tile(jnp.repeat(inv_std, rows_per_plane), B).reshape(total_rows, 1)

    # Dtype-scaled row tile: constant ~8 MiB byte budget per block, row count kept a
    # multiple of the sublane-packing factor (8 f32 / 16 bf16 / 32 int8).
    itemsize = jnp.dtype(img.dtype).itemsize
    sublane_mult = 8 * max(1, 4 // itemsize)
    th = (_BLOCK_BYTES // (_LANES * itemsize)) // sublane_mult * sublane_mult
    th = max(th, sublane_mult)
    TH = total_rows if total_rows <= th else th

    img_spec = pl.BlockSpec((TH, _LANES), lambda r: (r, 0))
    col_spec = pl.BlockSpec((TH, 1), lambda r: (r, 0))

    out = pl.pallas_call(
        _normalization_kernel,
        out_shape=jax.ShapeDtypeStruct(x.shape, img.dtype),
        grid=(pl.cdiv(total_rows, TH),),
        in_specs=[col_spec, col_spec, img_spec],
        out_specs=img_spec,
        compiler_params=pltpu.CompilerParams(
            dimension_semantics=("parallel",),
            vmem_limit_bytes=_VMEM_LIMIT,
        ),
        cost_estimate=pl.CostEstimate(
            flops=2 * total_rows * _LANES,
            transcendentals=0,
            bytes_accessed=2 * total_rows * _LANES * itemsize + 2 * total_rows * 4,
        ),
    )(mean_col, inv_col, x)

    out = out.reshape(B, C, HW_pad)
    if HW_pad != HW:
        out = out[:, :, :HW]
    return out.reshape(B, C, H, W)


if __name__ == "__main__":
    key = jax.random.PRNGKey(0)

    # Per-channel constants the style-transfer script uses.
    mean = jnp.array([0.485, 0.456, 0.406], dtype=jnp.float32)
    std = jnp.array([0.229, 0.224, 0.225], dtype=jnp.float32)

    # Small NCHW input consistent with the module's forward (H*W % 128 == 0 path).
    img = jax.random.uniform(key, (2, 3, 16, 16), dtype=jnp.float32)
    out = jax.block_until_ready(normalization(img, mean, std))
    ref = (img - mean[None, :, None, None]) / std[None, :, None, None]
    assert out.shape == img.shape and out.dtype == img.dtype
    assert jnp.allclose(out, ref, rtol=1e-5, atol=1e-6)

    # Non-128-divisible plane: exercises the wrapper-side pad path (stays lane-dense).
    img2 = jax.random.uniform(jax.random.PRNGKey(1), (2, 3, 10, 10), dtype=jnp.float32)
    out2 = jax.block_until_ready(normalization(img2, mean, std))
    ref2 = (img2 - mean[None, :, None, None]) / std[None, :, None, None]
    assert out2.shape == img2.shape and out2.dtype == img2.dtype
    assert jnp.allclose(out2, ref2, rtol=1e-5, atol=1e-6)

    print("KERNEL_OK")
</pallas_src>

<mosaic_0001>
module attributes {stable_mosaic.version = 11 : i64} {
  func.func @_normalization_kernel(%arg0: i32, %arg1: memref<12x1xf32, #tpu.memory_space<vmem>>, %arg2: memref<12x1xf32, #tpu.memory_space<vmem>>, %arg3: memref<12x128xf32, #tpu.memory_space<vmem>>, %arg4: memref<12x128xf32, #tpu.memory_space<vmem>>) attributes {dimension_semantics = [#tpu.dimension_semantics<parallel>], iteration_bounds = array<i64: 1>, scalar_prefetch = 0 : i64, scratch_operands = 0 : i64, tpu.core_type = #tpu.core_type<tc>, window_params = [{transform_indices = @transform_0, window_bounds = array<i64: 12, 1>}, {transform_indices = @transform_1, window_bounds = array<i64: 12, 1>}, {transform_indices = @transform_2, window_bounds = array<i64: 12, 128>}, {transform_indices = @transform_3, window_bounds = array<i64: 12, 128>}]} {
    %c0 = arith.constant 0 : index
    %c0_0 = arith.constant 0 : index
    %0 = vector.load %arg3[%c0, %c0_0] : memref<12x128xf32, #tpu.memory_space<vmem>>, vector<12x128xf32>
    %c0_1 = arith.constant 0 : index
    %c0_2 = arith.constant 0 : index
    %1 = vector.load %arg1[%c0_1, %c0_2] : memref<12x1xf32, #tpu.memory_space<vmem>>, vector<12x1xf32>
    %2 = vector.broadcast %1 : vector<12x1xf32> to vector<12x128xf32>
    %3 = arith.subf %0, %2 : vector<12x128xf32>
    %c0_3 = arith.constant 0 : index
    %c0_4 = arith.constant 0 : index
    %4 = vector.load %arg2[%c0_3, %c0_4] : memref<12x1xf32, #tpu.memory_space<vmem>>, vector<12x1xf32>
    %5 = vector.broadcast %4 : vector<12x1xf32> to vector<12x128xf32>
    %6 = arith.mulf %3, %5 : vector<12x128xf32>
    %c0_5 = arith.constant 0 : index
    %c0_6 = arith.constant 0 : index
    %7 = vector.load %arg4[%c0_5, %c0_6] : memref<12x128xf32, #tpu.memory_space<vmem>>, vector<12x128xf32>
    tpu.vector_store %arg4[%c0_5, %c0_6], %6 {strides = array<i32>} : memref<12x128xf32, #tpu.memory_space<vmem>>, vector<12x128xf32>,
    return
  }
  func.func @transform_0(%arg0: i32) -> (i32, i32) {
    %c0_i32 = arith.constant 0 : i32
    %c0_i32_0 = arith.constant 0 : i32
    return %arg0, %c0_i32 : i32, i32
  }
  func.func @transform_1(%arg0: i32) -> (i32, i32) {
    %c0_i32 = arith.constant 0 : i32
    %c0_i32_0 = arith.constant 0 : i32
    return %arg0, %c0_i32 : i32, i32
  }
  func.func @transform_2(%arg0: i32) -> (i32, i32) {
    %c0_i32 = arith.constant 0 : i32
    %c0_i32_0 = arith.constant 0 : i32
    return %arg0, %c0_i32 : i32, i32
  }
  func.func @transform_3(%arg0: i32) -> (i32, i32) {
    %c0_i32 = arith.constant 0 : i32
    %c0_i32_0 = arith.constant 0 : i32
    return %arg0, %c0_i32 : i32, i32
  }
}

</mosaic_0001>

<bundles_post_ra>
// kernel: tpu_custom_call.1
= control target key start
LH: loop header
LB: loop body
LE: loop exit
PB: predicated region body
PF: predicated region fallthrough
CT: control target
= control target key end

     0   :  { %v97_v2 = vmov 0   ;;  %s142_s0 = inlined_call_operand.vmem [shape: f32[12,1], index: 0, kind: input, shape index: {}]   ;;  %s143_s1 = inlined_call_operand.vmem [shape: f32[12,1], index: 1, kind: input, shape index: {}]   ;;  %s144_s2 = inlined_call_operand.vmem [shape: f32[12,128], index: 2, kind: input, shape index: {}]   ;;  %s145_s3 = inlined_call_operand.hbm [shape: f32[12,128], index: 3, kind: output, shape index: {}]  }
   0x1   :  { %v31_v0 = vld [vmem:[%s143_s1] sm:$0xff]  ;;  %70 = vset.pattern.permute.xlu1 %v97_v2  ;;  %69 = vset.pattern.permute.xlu0 %v97_v2 }
   0x2   :  { %v17_v1 = vld [vmem:[%s142_s0] sm:$0xff] }
   0x3   :  { %8 = vsyncpa [#allocation3], 0  ;;  %35 = vperm.xlu1 %70, %v31_v0   ;;  %21 = vperm.xlu0 %69, %v17_v1   ;;  %v32_v3 = vld [vmem:[%s143_s1 + $0x8] sm:$0xf]  ;;  %v15_v5 = vld [vmem:[%s144_s2] sm:$0xff]  ;;  %s98_s1 = smov [#allocation2]  }
   0x4   :  { %v18_v4 = vld [vmem:[%s142_s0 + $0x8] sm:$0xf]  ;;  %s51_s24 = sshll.u32 %s98_s1, 4  ;;  %s53_s0 = sshll.u32 %s145_s3, 4  ;;  %s52_s24 = int_to_ptr.vmem [resolvable:$true] %s51_s24  ;;  %s54_s0 = int_to_ptr.hbm [resolvable:$true] %s53_s0 }
   0x5   :  { %v16_v10 = vld [vmem:[%s144_s2 + $0x8] sm:$0xf]  ;;  %s99_s27 = smov 128   ;;  %s100_s28 = smov 8  }
   0xb   :  { %40 = vperm.xlu1 %70, %v32_v3   ;;  %26 = vperm.xlu0 %69, %v18_v4  }
  0x75   :  { %v36_v6 = vpop.permute.xlu1 %35  ;;  %v22_v7 = vpop.permute.xlu0 %21 }
  0x76   :  { %v29_v8 = vsub.f32 %v15_v5, %v22_v7 }
  0x78   :  { %v43_v9 = vmul.f32 %v36_v6, %v29_v8 }
  0x7a   :  { %45 = vst [vmem:[#allocation2] sm:$0xff] %v43_v9 }
  0x7d   :  { %v27_v11 = vpop.permute.xlu0 %26  ;;  %v41_v13 = vpop.permute.xlu1 %40 }
  0x7e   :  { %v30_v12 = vsub.f32 %v16_v10, %v27_v11 }
  0x80   :  { %v44_v14 = vmul.f32 %v41_v13, %v30_v12 }
  0x82   :  { %46 = vst [vmem:[#allocation2 + $0x8] sm:$0xf] %v44_v14 }
  0x83   :  { %59 = dma.vmem_to_hbm [thread:$0]  %s52_s24, 256, %s54_s0, [#allocation3], %s99_s27, %s99_s27, %s100_s28  }
  0x84   :  { %95 = dma.done.wait [#allocation3], 256  }
  0x85   :  { %96 = vsyncadd [#allocation3], 4294967040 }
  0x86   :  { %64 = vsyncpa [#allocation3], 1 }

</bundles_post_ra>
